<compile_context>
chip_gen: v5e
topology: v5e:2x2
jax: 0.10.0
libtpu: 0.0.40
codegen_flags: <defaults>
</compile_context>

<pallas_src>
import jax
import jax.numpy as jnp
from jax.experimental import pallas as pl
from jax.experimental.pallas import tpu as pltpu


def _round_up(n, m):
    return (n + m - 1) // m * m


def _tile_bytes(rows, cols, itemsize):
    # VMEM footprint of a (rows, cols) buffer after (8, 128) tiling/padding.
    return _round_up(max(rows, 1), 8) * _round_up(max(cols, 1), 128) * itemsize


def _pick_row_tile(batch, row_tile):
    """Row tile: multiple of 8; >= 2 grid steps when the batch can be split
    (so the "parallel" axis can shard across both v7x TensorCores)."""
    tb = max(8, _round_up(row_tile, 8))
    if batch >= 16 and pl.cdiv(batch, tb) < 2:
        tb = _round_up((batch + 1) // 2, 8)
    if pl.cdiv(batch, tb) <= 1:
        # One block covering the whole (small) batch: a full-dim block shape
        # is always legal, no padding of rows needed.
        tb = batch
    return tb


def _gatenet_kernel(x_ref, w1_ref, b1_ref, w2_ref, b2_ref, out_ref):
    # fc1: MXU matmul, f32 accumulation.  Cast x to the weight compute dtype
    # (bf16 by default) INSIDE the kernel -> no extra HBM pass in the wrapper.
    x = x_ref[...].astype(w1_ref.dtype)
    h = jnp.dot(x, w1_ref[...], preferred_element_type=jnp.float32) + b1_ref[...]
    # fc2: cast the hidden activation back to the compute dtype so the second
    # matmul also runs at native MXU rate; accumulate in f32, add f32 bias.
    y = jnp.dot(h.astype(w2_ref.dtype), w2_ref[...],
                preferred_element_type=jnp.float32) + b2_ref[...]
    out_ref[...] = y.astype(out_ref.dtype)


def prepare_gatenet_params(w1, b1, w2, b2, *, compute_dtype=jnp.bfloat16):
    """One-time layout work (call at init, NOT per forward call).

    PyTorch Linear weights are (out, in); store them as (in, out) in the MXU
    compute dtype.  Biases stay f32 and are added after f32 accumulation.
    """
    w1_t = jnp.asarray(w1).T.astype(compute_dtype)              # (cls_num, 2*cls_num)
    w2_t = jnp.asarray(w2).T.astype(compute_dtype)              # (2*cls_num, ways)
    b1_r = jnp.asarray(b1, dtype=jnp.float32).reshape(1, -1)    # (1, 2*cls_num)
    b2_r = jnp.asarray(b2, dtype=jnp.float32).reshape(1, -1)    # (1, ways)
    return w1_t, b1_r, w2_t, b2_r


def gatenet_forward(x, params, *, row_tile=256):
    """GateNet forward: fc2(fc1(x)) -> (B, ways) float32.

    `params` must come from prepare_gatenet_params (prepared once, reused).
    """
    w1_t, b1_r, w2_t, b2_r = params
    B, Cin = x.shape
    Cin_w, Hid = w1_t.shape
    Hid_w, Out = w2_t.shape
    assert Cin_w == Cin and Hid_w == Hid
    assert b1_r.shape == (1, Hid) and b2_r.shape == (1, Out)

    TB = _pick_row_tile(B, row_tile)
    grid = (pl.cdiv(B, TB),)

    # VMEM budget: resident single-buffered weights/biases + double-buffered
    # x/out tiles + in-kernel staging of the fc1 activation.  Capped at 48 MiB
    # (safe under v7x's 64 MiB physical VMEM).
    wsz = jnp.dtype(w1_t.dtype).itemsize
    xsz = jnp.dtype(x.dtype).itemsize
    vmem_est = (
        _tile_bytes(Cin, Hid, wsz) + _tile_bytes(Hid, Out, wsz)
        + _tile_bytes(1, Hid, 4) + _tile_bytes(1, Out, 4)
        + 2 * _tile_bytes(TB, Cin, xsz)
        + 2 * _tile_bytes(TB, Out, 4)
        + _tile_bytes(TB, Cin, wsz)
        + _tile_bytes(TB, Hid, 4) + _tile_bytes(TB, Hid, wsz)
    )
    vmem_limit = min(48 * 1024 * 1024, max(4 * 1024 * 1024, int(1.5 * vmem_est)))

    def _resident(shape):
        # Constant index_map -> single buffer is enough (halves resident VMEM).
        return pl.BlockSpec(shape, lambda i: (0, 0), pipeline_mode=pl.Buffered(1))

    return pl.pallas_call(
        _gatenet_kernel,
        out_shape=jax.ShapeDtypeStruct((B, Out), jnp.float32),
        grid=grid,
        in_specs=[
            pl.BlockSpec((TB, Cin), lambda i: (i, 0)),   # x row tile (unpadded)
            _resident((Cin, Hid)),                       # fc1 weight (in, out)
            _resident((1, Hid)),                         # fc1 bias (f32)
            _resident((Hid, Out)),                       # fc2 weight (in, out)
            _resident((1, Out)),                         # fc2 bias (f32)
        ],
        out_specs=pl.BlockSpec((TB, Out), lambda i: (i, 0)),   # unpadded (B, ways)
        compiler_params=pltpu.CompilerParams(
            dimension_semantics=("parallel",),
            vmem_limit_bytes=vmem_limit,
        ),
    )(x, w1_t, b1_r, w2_t, b2_r)


def _reference(x, w1, b1, w2, b2):
    """Pure-JAX reference mirroring the PyTorch forward (f32)."""
    h = x @ jnp.transpose(w1) + b1
    return h @ jnp.transpose(w2) + b2


if __name__ == "__main__":
    B, cls_num, ways = 8, 32, 4
    hidden = 2 * cls_num

    key = jax.random.PRNGKey(0)
    kx, kw1, kb1, kw2, kb2 = jax.random.split(key, 5)

    x = jax.random.normal(kx, (B, cls_num), dtype=jnp.float32)
    # deterministic "module parameters" (shapes from nn.Module.__init__)
    w1 = 0.1 * jax.random.normal(kw1, (hidden, cls_num), dtype=jnp.float32)  # fc1.weight
    b1 = 0.1 * jax.random.normal(kb1, (hidden,), dtype=jnp.float32)          # fc1.bias
    w2 = 0.1 * jax.random.normal(kw2, (ways, hidden), dtype=jnp.float32)     # fc2.weight
    b2 = 0.1 * jax.random.normal(kb2, (ways,), dtype=jnp.float32)            # fc2.bias

    ref = _reference(x, w1, b1, w2, b2)

    # f32 compute path: tight match against the pure-JAX reference.
    params_f32 = prepare_gatenet_params(w1, b1, w2, b2, compute_dtype=jnp.float32)
    out_f32 = jax.block_until_ready(
        jax.jit(lambda xx: gatenet_forward(xx, params_f32))(x))
    assert out_f32.shape == (B, ways)
    assert jnp.allclose(out_f32, ref, rtol=1e-4, atol=1e-5), (out_f32, ref)

    # Default bf16-input / f32-accumulate path (MXU-native on v5e/v6e/v7x).
    params_bf16 = prepare_gatenet_params(w1, b1, w2, b2)
    out_bf16 = jax.block_until_ready(
        jax.jit(lambda xx: gatenet_forward(xx, params_bf16))(x))
    assert out_bf16.shape == (B, ways)
    assert jnp.allclose(out_bf16, ref, rtol=3e-2, atol=3e-2), (out_bf16, ref)

    print("KERNEL_OK")
</pallas_src>

<mosaic_0001>
module attributes {stable_mosaic.version = 11 : i64} {
  func.func @_gatenet_kernel(%arg0: i32, %arg1: memref<8x32xf32, #tpu.memory_space<vmem>>, %arg2: memref<32x64xf32, #tpu.memory_space<vmem>>, %arg3: memref<1x64xf32, #tpu.memory_space<vmem>>, %arg4: memref<64x4xf32, #tpu.memory_space<vmem>>, %arg5: memref<1x4xf32, #tpu.memory_space<vmem>>, %arg6: memref<8x4xf32, #tpu.memory_space<vmem>>) attributes {dimension_semantics = [#tpu.dimension_semantics<parallel>], iteration_bounds = array<i64: 1>, scalar_prefetch = 0 : i64, scratch_operands = 0 : i64, tpu.core_type = #tpu.core_type<tc>, window_params = [{transform_indices = @transform_0, window_bounds = array<i64: 8, 32>}, {pipeline_mode = #tpu.pipeline_mode<synchronous>, transform_indices = @transform_1, window_bounds = array<i64: 32, 64>}, {pipeline_mode = #tpu.pipeline_mode<synchronous>, transform_indices = @transform_2, window_bounds = array<i64: 1, 64>}, {pipeline_mode = #tpu.pipeline_mode<synchronous>, transform_indices = @transform_3, window_bounds = array<i64: 64, 4>}, {pipeline_mode = #tpu.pipeline_mode<synchronous>, transform_indices = @transform_4, window_bounds = array<i64: 1, 4>}, {transform_indices = @transform_5, window_bounds = array<i64: 8, 4>}]} {
    %c0 = arith.constant 0 : index
    %c0_0 = arith.constant 0 : index
    %0 = vector.load %arg1[%c0, %c0_0] : memref<8x32xf32, #tpu.memory_space<vmem>>, vector<8x32xf32>
    %c0_1 = arith.constant 0 : index
    %c0_2 = arith.constant 0 : index
    %1 = vector.load %arg2[%c0_1, %c0_2] : memref<32x64xf32, #tpu.memory_space<vmem>>, vector<32x64xf32>
    %cst = arith.constant dense<0.000000e+00> : vector<8x64xf32>
    %2 = tpu.matmul %0, %1, %cst {dimension_numbers = #tpu.dot_dimension_numbers<[1], [0], [0], [1], [0, 0, 1, 1], [], []>} : vector<8x32xf32>, vector<32x64xf32>, vector<8x64xf32> -> vector<8x64xf32>
    %c0_3 = arith.constant 0 : index
    %c0_4 = arith.constant 0 : index
    %3 = vector.load %arg3[%c0_3, %c0_4] : memref<1x64xf32, #tpu.memory_space<vmem>>, vector<1x64xf32>
    %4 = vector.broadcast %3 : vector<1x64xf32> to vector<8x64xf32>
    %5 = arith.addf %2, %4 : vector<8x64xf32>
    %c0_5 = arith.constant 0 : index
    %c0_6 = arith.constant 0 : index
    %6 = vector.load %arg4[%c0_5, %c0_6] : memref<64x4xf32, #tpu.memory_space<vmem>>, vector<64x4xf32>
    %cst_7 = arith.constant dense<0.000000e+00> : vector<8x4xf32>
    %7 = tpu.matmul %5, %6, %cst_7 {dimension_numbers = #tpu.dot_dimension_numbers<[1], [0], [0], [1], [0, 0, 1, 1], [], []>} : vector<8x64xf32>, vector<64x4xf32>, vector<8x4xf32> -> vector<8x4xf32>
    %c0_8 = arith.constant 0 : index
    %c0_9 = arith.constant 0 : index
    %8 = vector.load %arg5[%c0_8, %c0_9] : memref<1x4xf32, #tpu.memory_space<vmem>>, vector<1x4xf32>
    %9 = vector.broadcast %8 : vector<1x4xf32> to vector<8x4xf32>
    %10 = arith.addf %7, %9 : vector<8x4xf32>
    %c0_10 = arith.constant 0 : index
    %c0_11 = arith.constant 0 : index
    %11 = vector.load %arg6[%c0_10, %c0_11] : memref<8x4xf32, #tpu.memory_space<vmem>>, vector<8x4xf32>
    tpu.vector_store %arg6[%c0_10, %c0_11], %10 {strides = array<i32>} : memref<8x4xf32, #tpu.memory_space<vmem>>, vector<8x4xf32>,
    return
  }
  func.func @transform_0(%arg0: i32) -> (i32, i32) {
    %c0_i32 = arith.constant 0 : i32
    %c0_i32_0 = arith.constant 0 : i32
    return %arg0, %c0_i32 : i32, i32
  }
  func.func @transform_1(%arg0: i32) -> (i32, i32) {
    %c0_i32 = arith.constant 0 : i32
    %c0_i32_0 = arith.constant 0 : i32
    %c0_i32_1 = arith.constant 0 : i32
    return %c0_i32, %c0_i32_0 : i32, i32
  }
  func.func @transform_2(%arg0: i32) -> (i32, i32) {
    %c0_i32 = arith.constant 0 : i32
    %c0_i32_0 = arith.constant 0 : i32
    %c0_i32_1 = arith.constant 0 : i32
    return %c0_i32, %c0_i32_0 : i32, i32
  }
  func.func @transform_3(%arg0: i32) -> (i32, i32) {
    %c0_i32 = arith.constant 0 : i32
    %c0_i32_0 = arith.constant 0 : i32
    %c0_i32_1 = arith.constant 0 : i32
    return %c0_i32, %c0_i32_0 : i32, i32
  }
  func.func @transform_4(%arg0: i32) -> (i32, i32) {
    %c0_i32 = arith.constant 0 : i32
    %c0_i32_0 = arith.constant 0 : i32
    %c0_i32_1 = arith.constant 0 : i32
    return %c0_i32, %c0_i32_0 : i32, i32
  }
  func.func @transform_5(%arg0: i32) -> (i32, i32) {
    %c0_i32 = arith.constant 0 : i32
    %c0_i32_0 = arith.constant 0 : i32
    return %arg0, %c0_i32 : i32, i32
  }
}

</mosaic_0001>

<bundles_post_ra>
// kernel: _lambda_.1
= control target key start
LH: loop header
LB: loop body
LE: loop exit
PB: predicated region body
PF: predicated region fallthrough
CT: control target
= control target key end

     0   :  { %10 = vsyncpa [#allocation3], 0  ;;  %s323_s0 = inlined_call_operand.hbm [shape: f32[8,32], index: 0, kind: input, shape index: {}]   ;;  %s324_s1 = inlined_call_operand.hbm [shape: f32[32,64], index: 1, kind: input, shape index: {}]   ;;  %s325_s2 = inlined_call_operand.hbm [shape: f32[1,64], index: 2, kind: input, shape index: {}]   ;;  %s326_s3 = inlined_call_operand.hbm [shape: f32[64,4], index: 3, kind: input, shape index: {}]   ;;  %s327_s4 = inlined_call_operand.vmem [shape: f32[1,4], index: 4, kind: input, shape index: {}]   ;;  %s328_s5 = inlined_call_operand.vmem [shape: f32[8,4], index: 5, kind: output, shape index: {}]  }
   0x1   :  { %11 = vsyncpa [#allocation5], 0  ;;  %s28_s20 = sshll.u32 %s324_s1, 4  ;;  %s29_s20 = int_to_ptr.hbm [resolvable:$true] %s28_s20 }
   0x2   :  { %12 = vsyncpa [#allocation8], 0  ;;  %s269_s21 = smov [#allocation4]   ;;  %s18_s25 = sshll.u32 %s323_s0, 4  ;;  %s19_s25 = int_to_ptr.hbm [resolvable:$true] %s18_s25 }
   0x3   :  { %s30_s22 = sshll.u32 %s269_s21, 4  ;;  %s270_s26 = smov 128   ;;  %s31_s22 = int_to_ptr.vmem [resolvable:$true] %s30_s22 }
   0x4   :  { %s271_s27 = smov 8   ;;  %s272_s28 = smov [#allocation2]  }
   0x5   :  { %36 = dma.hbm_to_vmem [thread:$0]  %s29_s20, 512, %s31_s22, [#allocation5], %s270_s26, %s270_s26, %s271_s27  }
   0x6   :  { %s20_s29 = sshll.u32 %s272_s28, 4  ;;  %s42_s7 = sshll.u32 %s325_s2, 4  ;;  %s21_s29 = int_to_ptr.vmem [resolvable:$true] %s20_s29  ;;  %s43_s7 = int_to_ptr.hbm [resolvable:$true] %s42_s7 }
   0x7   :  { %23 = dma.hbm_to_vmem [thread:$0]  %s19_s25, 128, %s21_s29, [#allocation3]  }
   0x8   :  { %s52_s9 = sshll.u32 %s326_s3, 4  ;;  %s273_s10 = smov [#allocation6]   ;;  %s53_s9 = int_to_ptr.hbm [resolvable:$true] %s52_s9 }
   0x9   :  { %s44_s11 = sshll.u32 %s273_s10, 4  ;;  %s274_s0 = smov [#allocation7]   ;;  %s45_s11 = int_to_ptr.vmem [resolvable:$true] %s44_s11 }
   0xa   :  { %47 = dma.hbm_to_vmem [thread:$0]  %s43_s7, 16, %s45_s11, [#allocation5]  }
   0xb   :  { %s54_s12 = sshll.u32 %s274_s0, 4  ;;  %s55_s12 = int_to_ptr.vmem [resolvable:$true] %s54_s12 }
   0xc   :  { %60 = dma.hbm_to_vmem [thread:$0]  %s53_s9, 1024, %s55_s12, [#allocation8], %s270_s26, %s270_s26, %s271_s27  }
   0xd   :  { %263 = dma.done.wait [#allocation3], 128  }
   0xe   :  { %264 = vsyncadd [#allocation3], 4294967168 }
   0xf   :  { %265 = dma.done.wait [#allocation5], 528  }
  0x10   :  { %266 = vsyncadd [#allocation5], 4294966768 }
  0x11   :  { %267 = dma.done.wait [#allocation8], 1024  }
  0x12   :  { %268 = vsyncadd [#allocation8], 4294966272  ;;  %v83_v0 = vld [vmem:[#allocation4 + $0x18] sm:$0xff]  ;;  %v82_v1 = vld [vmem:[#allocation4 + $0x10] sm:$0xff]  ;;  %vm88_vm0 = vcmask 261120   ;;  %vm124_vm1 = vcmask 523264  }
  0x13   :  { %104 = vmatpush.msra.mxu0 %v83_v0  ;;  %v119_v2 = vld [vmem:[#allocation7 + $0x38] sm:$0xff]  ;;  %v81_v3 = vld [vmem:[#allocation4 + $0x8] sm:$0xff]  ;;  %v118_v4 = vld [vmem:[#allocation7 + $0x30] sm:$0xff]  ;;  %vm148_vm2 = vcmask 31744  }
  0x14   :  { %136 = vmatpush.msra.mxu1 %v119_v2  ;;  %v117_v5 = vld [vmem:[#allocation7 + $0x28] sm:$0xff]  ;;  %v80_v6 = vld [vmem:[#allocation4] sm:$0xff]  ;;  %v79_v7 = vld [vmem:[#allocation2] sm:$0xff] }
  0x15   :  { %105 = vmatpush.msra.mxu0 %v82_v1  ;;  %v116_v8 = vld [vmem:[#allocation7 + $0x20] sm:$0xff]  ;;  %v115_v9 = vld [vmem:[#allocation7 + $0x18] sm:$0xff]  ;;  %v114_v10 = vld [vmem:[#allocation7 + $0x10] sm:$0xff] }
  0x16   :  { %137 = vmatpush.msra.mxu1 %v118_v4  ;;  %v113_v11 = vld [vmem:[#allocation7 + $0x8] sm:$0xff]  ;;  %v112_v12 = vld [vmem:[#allocation7] sm:$0xff]  ;;  %v165_v13 = vld [vmem:[#allocation6] ss:$0 sm:$0xff] }
  0x17   :  { %106 = vmatpush.msra.mxu0 %v81_v3  ;;  %v166_v16 = vld [vmem:[%s327_s4] ss:$0 sm:$0xff] }
  0x18   :  { %138 = vmatpush.msra.mxu1 %v117_v5 }
  0x19   :  { %107 = vmatpush.msra.mxu0 %v80_v6 }
  0x1a   :  { %157 = vmatmul.msk.f32.vlgmr.msra.gmra.mxu0 %vm88_vm0, %v79_v7  ;;  %139 = vmatpush.msra.mxu1 %v116_v8 }
  0x1c   :  { %140 = vmatpush.msra.mxu1 %v115_v9 }
  0x1e   :  { %141 = vmatpush.msra.mxu1 %v114_v10 }
  0x20   :  { %142 = vmatpush.msra.mxu1 %v113_v11 }
  0x22   :  { %143 = vmatpush.msra.mxu1 %v112_v12 }
  0x97   :  { %v109_v14 = vpop.f32.mrf.mxu0 }
  0x98   :  { %v110_v15 = vadd.f32 %v165_v13, %v109_v14 }
  0x9a   :  { %158 = vmatmul.msk.f32.vlgmr.msra.gmra.mxu1 %vm124_vm1, %v110_v15 }
 0x117   :  { %v145_v17 = vpop.f32.mrf.mxu1 }
 0x118   :  { %v146_v18 = vadd.f32 %v166_v16, %v145_v17 }
 0x11a   :  { %149 = vst.msk [vmem:[%s328_s5] sm:$0xff] %vm148_vm2, %v146_v18 }
 0x11b   :  { %154 = vsyncpa [#allocation3], 1 }
 0x11c   :  { %155 = vsyncpa [#allocation5], 1 }
 0x11d   :  { %156 = vsyncpa [#allocation8], 1 }

</bundles_post_ra>
